<compile_context>
chip_gen: v6e
topology: v6e:2x2x1
jax: 0.10.0
libtpu: 0.0.40
codegen_flags: <defaults>
</compile_context>

<pallas_src>
import functools

import jax
import jax.numpy as jnp
import numpy as np
from jax.experimental import pallas as pl
from jax.experimental.pallas import tpu as pltpu


def _round_up(x, m):
    return ((x + m - 1) // m) * m


def _bessel_kernel(d_ref, freq_ref, out_ref, *, inv_cutoff, p, a, b, c):
    # d_ref:   (1, TE)  lane-dense block of distances (TE edges on lanes)
    # freq_ref:(R, 1)   full frequency column (radial index on sublanes)
    # out_ref: (R, TE)  lane-dense output block
    x = d_ref[...] * inv_cutoff                      # d_scaled, (1, TE)

    # Envelope: 1/x + a*x^(p-1) + b*x^p + c*x^(p+1)
    #         = 1/x + x^(p-1) * (a + x*(b + c*x))    (Horner form)
    inv_x = pl.reciprocal(x, approx=False)           # exact, keeps VPU free
    env = inv_x + (x ** (p - 1)) * (a + x * (b + c * x))   # (1, TE)

    # (R,1) * (1,TE) -> (R,TE); edges stay on the lane axis for dense stores.
    out_ref[...] = env * jnp.sin(freq_ref[...] * x)


def bessel_basis_layer(d, frequencies, *, cutoff=20.0, envelope_exponent=6,
                       tile_e=8192):
    """d: [E, 1] (or [E]) float32, frequencies: [R] float32 -> [E, R] float32."""
    d_flat = jnp.asarray(d, jnp.float32).reshape(-1)
    E = d_flat.shape[0]
    R = frequencies.shape[0]

    p = envelope_exponent + 1
    a = -(p + 1) * (p + 2) / 2.0
    b = float(p * (p + 2))
    c = -p * (p + 1) / 2.0

    # Tile along the edge axis; pad E so it divides evenly (pad value 1.0 is
    # benign for 1/x and is sliced off below).
    tile = max(128, min(int(tile_e), _round_up(E, 128)))
    tile = _round_up(tile, 128)
    E_pad = _round_up(E, tile)

    d_row = d_flat.reshape(1, E)
    if E_pad != E:
        d_row = jnp.pad(d_row, ((0, 0), (0, E_pad - E)), constant_values=1.0)
    freq_col = jnp.asarray(frequencies, jnp.float32).reshape(R, 1)

    kernel = functools.partial(
        _bessel_kernel, inv_cutoff=1.0 / float(cutoff), p=p, a=a, b=b, c=c
    )

    out_re = pl.pallas_call(
        kernel,
        out_shape=jax.ShapeDtypeStruct((R, E_pad), jnp.float32),
        grid_spec=pltpu.PrefetchScalarGridSpec(
            num_scalar_prefetch=0,
            grid=(E_pad // tile,),
            in_specs=[
                pl.BlockSpec((1, tile), lambda i: (0, i)),   # distances (lane-dense)
                pl.BlockSpec((R, 1), lambda i: (0, 0)),      # frequencies (full)
            ],
            out_specs=pl.BlockSpec((R, tile), lambda i: (0, i)),
        ),
        compiler_params=pltpu.CompilerParams(
            dimension_semantics=("parallel",),
        ),
    )(d_row, freq_col)

    # Layout plumbing only: present the module's [E, R] view. Downstream code
    # that can consume [R, E] directly may skip this transpose.
    return out_re[:, :E].T


def bessel_basis_ref(d, frequencies, *, cutoff=20.0, envelope_exponent=6):
    """Pure-JAX reference mirroring the PyTorch module."""
    p = envelope_exponent + 1
    a = -(p + 1) * (p + 2) / 2.0
    b = p * (p + 2) * 1.0
    c = -p * (p + 1) / 2.0
    x = d / cutoff
    x_p_0 = x ** (p - 1)
    x_p_1 = x_p_0 * x
    x_p_2 = x_p_1 * x
    env = 1.0 / x + a * x_p_0 + b * x_p_1 + c * x_p_2
    return env * jnp.sin(frequencies.reshape(1, -1) * x)


if __name__ == "__main__":
    num_radial = 8
    num_edges = 1000          # deliberately not a multiple of 128 (tests padding)
    cutoff = 20.0
    envelope_exponent = 6

    # Deterministic parameter init, matching reset_params: pi * arange(1, R+1)
    frequencies = (np.pi * jnp.arange(1.0, num_radial + 1.0)).astype(jnp.float32)

    # Deterministic example distances in (0, cutoff); strictly positive since
    # the envelope contains 1/x (same assumption as the PyTorch module).
    key = jax.random.PRNGKey(0)
    d = jax.random.uniform(
        key, (num_edges, 1), dtype=jnp.float32, minval=0.5, maxval=cutoff - 0.5
    )

    out = bessel_basis_layer(
        d, frequencies, cutoff=cutoff, envelope_exponent=envelope_exponent
    )
    out = jax.block_until_ready(out)
    assert out.shape == (num_edges, num_radial)

    ref = bessel_basis_ref(
        d, frequencies, cutoff=cutoff, envelope_exponent=envelope_exponent
    )
    np.testing.assert_allclose(np.asarray(out), np.asarray(ref),
                               rtol=1e-5, atol=1e-5)

    print("KERNEL_OK")
</pallas_src>

<mosaic_0001>
module attributes {stable_mosaic.version = 11 : i64} {
  func.func @_bessel_kernel(%arg0: i32, %arg1: memref<1x1024xf32, #tpu.memory_space<vmem>>, %arg2: memref<8x1xf32, #tpu.memory_space<vmem>>, %arg3: memref<8x1024xf32, #tpu.memory_space<vmem>>) attributes {dimension_semantics = [#tpu.dimension_semantics<parallel>], iteration_bounds = array<i64: 1>, scalar_prefetch = 0 : i64, scratch_operands = 0 : i64, tpu.core_type = #tpu.core_type<tc>, window_params = [{transform_indices = @transform_0, window_bounds = array<i64: 1, 1024>}, {pipeline_mode = #tpu.pipeline_mode<synchronous>, transform_indices = @transform_1, window_bounds = array<i64: 8, 1>}, {transform_indices = @transform_2, window_bounds = array<i64: 8, 1024>}]} {
    %c0 = arith.constant 0 : index
    %c0_0 = arith.constant 0 : index
    %0 = vector.load %arg1[%c0, %c0_0] : memref<1x1024xf32, #tpu.memory_space<vmem>>, vector<1x1024xf32>
    %cst = arith.constant 5.000000e-02 : f32
    %1 = vector.broadcast %cst : f32 to vector<1x1024xf32>
    %2 = arith.mulf %0, %1 : vector<1x1024xf32>
    %3 = tpu.reciprocal %2 : vector<1x1024xf32> -> vector<1x1024xf32>
    %4 = arith.mulf %2, %2 : vector<1x1024xf32>
    %5 = arith.mulf %4, %4 : vector<1x1024xf32>
    %6 = arith.mulf %4, %5 : vector<1x1024xf32>
    %cst_1 = arith.constant -2.800000e+01 : f32
    %7 = vector.broadcast %cst_1 : f32 to vector<1x1024xf32>
    %8 = arith.mulf %7, %2 : vector<1x1024xf32>
    %cst_2 = arith.constant 6.300000e+01 : f32
    %9 = vector.broadcast %cst_2 : f32 to vector<1x1024xf32>
    %10 = arith.addf %9, %8 : vector<1x1024xf32>
    %11 = arith.mulf %2, %10 : vector<1x1024xf32>
    %cst_3 = arith.constant -3.600000e+01 : f32
    %12 = vector.broadcast %cst_3 : f32 to vector<1x1024xf32>
    %13 = arith.addf %12, %11 : vector<1x1024xf32>
    %14 = arith.mulf %6, %13 : vector<1x1024xf32>
    %15 = arith.addf %3, %14 : vector<1x1024xf32>
    %c0_4 = arith.constant 0 : index
    %c0_5 = arith.constant 0 : index
    %16 = vector.load %arg2[%c0_4, %c0_5] : memref<8x1xf32, #tpu.memory_space<vmem>>, vector<8x1xf32>
    %17 = vector.broadcast %16 : vector<8x1xf32> to vector<8x1024xf32>
    %18 = vector.broadcast %2 : vector<1x1024xf32> to vector<8x1024xf32>
    %19 = arith.mulf %17, %18 : vector<8x1024xf32>
    %20 = math.sin %19 : vector<8x1024xf32>
    %21 = vector.broadcast %15 : vector<1x1024xf32> to vector<8x1024xf32>
    %22 = arith.mulf %21, %20 : vector<8x1024xf32>
    %c0_6 = arith.constant 0 : index
    %c0_7 = arith.constant 0 : index
    %23 = vector.load %arg3[%c0_6, %c0_7] : memref<8x1024xf32, #tpu.memory_space<vmem>>, vector<8x1024xf32>
    tpu.vector_store %arg3[%c0_6, %c0_7], %22 {strides = array<i32>} : memref<8x1024xf32, #tpu.memory_space<vmem>>, vector<8x1024xf32>,
    return
  }
  func.func @transform_0(%arg0: i32) -> (i32, i32) {
    %c0_i32 = arith.constant 0 : i32
    %c0_i32_0 = arith.constant 0 : i32
    return %c0_i32, %arg0 : i32, i32
  }
  func.func @transform_1(%arg0: i32) -> (i32, i32) {
    %c0_i32 = arith.constant 0 : i32
    %c0_i32_0 = arith.constant 0 : i32
    %c0_i32_1 = arith.constant 0 : i32
    return %c0_i32, %c0_i32_0 : i32, i32
  }
  func.func @transform_2(%arg0: i32) -> (i32, i32) {
    %c0_i32 = arith.constant 0 : i32
    %c0_i32_0 = arith.constant 0 : i32
    return %c0_i32, %arg0 : i32, i32
  }
}

</mosaic_0001>

<bundles_post_ra>
// kernel: tpu_custom_call.1
= control target key start
LH: loop header
LB: loop body
LE: loop exit
PB: predicated region body
PF: predicated region fallthrough
CT: control target
= control target key end

     0   :  { %s1940_s0 = inlined_call_operand.vmem [shape: f32[1,1024], index: 0, kind: input, shape index: {}]   ;;  %s1941_s1 = inlined_call_operand.vmem [shape: f32[8,1], index: 1, kind: input, shape index: {}]   ;;  %s1942_s2 = inlined_call_operand.hbm [shape: f32[8,1024], index: 2, kind: output, shape index: {}]  }
   0x1   :  { %v24_v0 = vld [vmem:[%s1941_s1] sm:$0xff] }
   0x2   :  { %7 = vsyncpa [#allocation3], 0  ;;  %v1111_v1 = vmov 0   ;;  %v31_v2 = vlaneseq  ;;  %v12_v4 = vld [vmem:[%s1940_s0] sm:$0xff]  ;;  %v1112_v48 = vmov 683565275  }
   0x3   :  { %1054 = vset.pattern.permute.xlu0 %v1111_v1  ;;  %v1142_v5 = vmul.f32 0.05, %v12_v4  ;;  %v1113_v52 = vmov 2475754826   ;;  %v1114_v54 = vmov 2131351028  }
   0x4   :  { %27 = vperm.xlu0 %1054, %v24_v0   ;;  %v1137_v3 = vshrl.u32 %v31_v2, 7  ;;  %v1115_v56 = vmov 2102212464   ;;  %v1116_v58 = vmov 920167782   ;;  %s1118_s0 = smov [#allocation2]  }
   0x5   :  { %v1185_v32 = vmul.f32 -28.0, %v1142_v5  ;;  %v1117_v1 = vmov 1326507024   ;;  %1055 = vrcp.f32 %v1142_v5  ;;  %s974_s1 = sshll.u32 %s1118_s0, 4  ;;  %s975_s1 = int_to_ptr.vmem [resolvable:$true] %s974_s1 }
   0x6   :  { %v33_v6 = vsub.s32 0, %v1137_v3  ;;  %v37_v7 = vsub.s32 1, %v1137_v3  ;;  %v41_v8 = vsub.s32 2, %v1137_v3  ;;  %v61_v9 = vsub.s32 7, %v1137_v3  ;;  %s1089_s13 = scalar_lea.vmem %s975_s1, 1024  ;;  %p1094_p1 = scmp.lt.s32.totalorder %s975_s1, %s975_s1 }
   0x7   :  { %v45_v28 = vsub.s32 3, %v1137_v3  ;;  %p1090_p0 = scmp.ne.s32.totalorder %s975_s1, %s1089_s13  ;;  %p1095_p2 = scmp.lt.s32.totalorder %s1089_s13, %s1089_s13 }
   0x8   :  { %v34_v10 = vrot.slane %v1142_v5, %v33_v6  ;;  %v38_v11 = vrot.slane %v1142_v5, %v37_v7  ;;  %v42_v12 = vrot.slane %v1142_v5, %v41_v8  ;;  %v62_v13 = vrot.slane %v1142_v5, %v61_v9 }
   0x9   :  { %v1190_v38 = vrot.slane %v1142_v5, %v45_v28  ;;  %p1096_p3 = por %p1095_p2, %p1094_p1 }
   0xb   :  { %p1097_p4 = pnand %p1096_p3, %p1090_p0 }
  0x7f   :  { %v1160_v14 = vpop.permute.xlu0 %27 }
  0x80   :  { %v1163_v15 = vmul.f32 %v34_v10, %v1160_v14  ;;  %v1166_v16 = vmul.f32 %v38_v11, %v1160_v14  ;;  %v1169_v17 = vmul.f32 %v42_v12, %v1160_v14  ;;  %v1172_v18 = vmul.f32 %v62_v13, %v1160_v14 }
  0x82   :  { %v79_v19 = vand.u32 2147483647, %v1163_v15  ;;  %v82_v20 = vand.u32 2139095040, %v1163_v15  ;;  %v183_v21 = vand.u32 2147483647, %v1166_v16  ;;  %v186_v22 = vand.u32 2139095040, %v1166_v16 }
  0x83   :  { %v290_v27 = vand.u32 2139095040, %v1169_v17  ;;  %v287_v45 = vand.u32 2147483647, %v1169_v17 }
  0x84   :  { %v83_v23 = vshrl.u32 %v82_v20, 23  ;;  %v86_v24 = vand.u32 8388607, %v79_v19  ;;  %v187_v25 = vshrl.u32 %v186_v22, 23  ;;  %v190_v26 = vand.u32 8388607, %v183_v21 }
  0x85   :  { %v291_v31 = vshrl.u32 %v290_v27, 23 }
  0x86   :  { %v982_v29 = vadd.s32 4294967169, %v83_v23  ;;  %v986_v30 = vadd.s32 4294967169, %v187_v25  ;;  %v87_v34 = vor.u32 8388608, %v86_v24  ;;  %v191_v35 = vor.u32 8388608, %v190_v26 }
  0x87   :  { %v990_v37 = vadd.s32 4294967169, %v291_v31 }
  0x88   :  { %v89_v33 = vadd.s32 1, %v982_v29  ;;  %v193_v36 = vadd.s32 1, %v986_v30  ;;  %v1192_v43 = vshll.u32 %v87_v34, 8  ;;  %v1194_v44 = vshll.u32 %v191_v35, 8 }
  0x89   :  { %v1197_v46 = vadd.s32 1, %v990_v37 }
  0x8a   :  { %vm90_vm0 = vcmp.gt.s32.totalorder %v89_v33, 0  ;;  %vm194_vm1 = vcmp.gt.s32.totalorder %v193_v36, 0 }
  0x8b   :  { %v91_v39 = vsel %vm90_vm0, %v89_v33, 0  ;;  %v195_v42 = vsel %vm194_vm1, %v193_v36, 0  ;;  %vm298_vm6 = vcmp.gt.s32.totalorder %v1197_v46, 0 }
  0x8c   :  { %v92_v40 = vshrl.u32 %v91_v39, 5  ;;  %v93_v41 = vand.u32 31, %v91_v39  ;;  %v1200_v50 = vshrl.u32 %v195_v42, 5  ;;  %v197_v51 = vand.u32 31, %v195_v42 }
  0x8e   :  { %v94_v47 = vsub.s32 32, %v93_v41  ;;  %v96_v49 = vshll.u32 %v1112_v48, %v93_v41  ;;  %v99_v53 = vshll.u32 %v1113_v52, %v93_v41  ;;  %v102_v55 = vshll.u32 %v1114_v54, %v93_v41 }
  0x8f   :  { %v105_v57 = vshll.u32 %v1115_v56, %v93_v41  ;;  %v108_v59 = vshll.u32 %v1116_v58, %v93_v41  ;;  %vm111_vm2 = vcmp.lt.s32.totalorder %v92_v40, 1  ;;  %vm112_vm3 = vcmp.lt.s32.totalorder %v92_v40, 2 }
  0x90   :  { %v97_v60 = vshrl.u32 %v1113_v52, %v94_v47  ;;  %v100_v61 = vshrl.u32 %v1114_v54, %v94_v47  ;;  %v103_v62 = vshrl.u32 %v1115_v56, %v94_v47  ;;  %v95_v63 = vshrl.u32 %v1112_v48, %v94_v47 }
  0x91   :  { %v106_v0 = vshrl.u32 %v1116_v58, %v94_v47  ;;  %v109_v2 = vshrl.u32 %v1117_v1, %v94_v47  ;;  %v198_v12 = vsub.s32 32, %v197_v51  ;;  %vm113_vm4 = vcmp.lt.s32.totalorder %v92_v40, 3 }
  0x92   :  { %v98_v4 = vor.u32 %v97_v60, %v96_v49  ;;  %v101_v10 = vor.u32 %v100_v61, %v99_v53  ;;  %v104_v11 = vor.u32 %v103_v62, %v102_v55  ;;  %vm114_vm5 = vcmp.lt.s32.totalorder %v92_v40, 4 }
  0x93   :  { %v107_v13 = vor.u32 %v106_v0, %v105_v57  ;;  %v110_v20 = vor.u32 %v109_v2, %v108_v59  ;;  %v200_v30 = vshll.u32 %v1112_v48, %v197_v51  ;;  %v201_v34 = vshrl.u32 %v1113_v52, %v198_v12 }
  0x94   :  { %v115_v22 = vsel %vm111_vm2, %v95_v63, %v98_v4  ;;  %v116_v23 = vsel %vm114_vm5, %v104_v11, 2102212464  ;;  %v119_v24 = vsel %vm111_vm2, %v98_v4, %v101_v10  ;;  %v123_v25 = vsel %vm111_vm2, %v101_v10, %v104_v11 }
  0x95   :  { %v117_v26 = vsel %vm113_vm4, %v101_v10, %v116_v23  ;;  %v120_v27 = vsel %vm114_vm5, %v107_v13, 920167782  ;;  %v124_v29 = vsel %vm114_vm5, %v110_v20, 1326507024  ;;  %v203_v35 = vshll.u32 %v1113_v52, %v197_v51 }
  0x96   :  { %v121_v31 = vsel %vm113_vm4, %v104_v11, %v120_v27  ;;  %v125_v33 = vsel %vm113_vm4, %v107_v13, %v124_v29  ;;  %v118_v36 = vsel %vm112_vm3, %v115_v22, %v117_v26  ;;  %v204_v41 = vshrl.u32 %v1114_v54, %v198_v12 }
  0x97   :  { %v122_v37 = vsel %vm112_vm3, %v119_v24, %v121_v31  ;;  %v126_v39 = vsel %vm112_vm3, %v123_v25, %v125_v33  ;;  %v202_v55 = vor.u32 %v201_v34, %v200_v30  ;;  %v206_v59 = vshll.u32 %v1114_v54, %v197_v51 }
  0x98   :  { %v1224_v42 = vmul.u32.u64.low %v1192_v43, %v126_v39  ;;  %v1225_v47 = vmul.u32.u64.high %v1192_v43, %v126_v39, %v1224_v42  ;;  %v1228_v49 = vmul.u32.u64.low %v1192_v43, %v122_v37  ;;  %v1229_v53 = vmul.u32.u64.high %v1192_v43, %v122_v37, %v1228_v49 }
  0x99   :  { %v205_v57 = vor.u32 %v204_v41, %v203_v35  ;;  %v207_v60 = vshrl.u32 %v1115_v56, %v198_v12  ;;  %v199_v40 = vshrl.u32 %v1112_v48, %v198_v12  ;;  %v209_v61 = vshll.u32 %v1115_v56, %v197_v51 }
  0x9a   :  { %v210_v62 = vshrl.u32 %v1116_v58, %v198_v12  ;;  %v213_v63 = vshrl.u32 %v1117_v1, %v198_v12  ;;  %v134_v0 = vmul.u32 %v1192_v43, %v118_v36  ;;  %v212_v4 = vshll.u32 %v1116_v58, %v197_v51 }
  0x9b   :  { %v208_v2 = vor.u32 %v207_v60, %v206_v59  ;;  %vm215_vm7 = vcmp.lt.s32.totalorder %v1200_v50, 1  ;;  %vm136_vm8 = vc.u32 %v1225_v47, %v1228_v49  ;;  %v137_v10 = vadd.s32 1, %v1229_v53 }
  0x9c   :  { %v211_v11 = vor.u32 %v210_v62, %v209_v61  ;;  %vm216_vm9 = vcmp.lt.s32.totalorder %v1200_v50, 2  ;;  %v214_v13 = vor.u32 %v213_v63, %v212_v4  ;;  %vm217_vm10 = vcmp.lt.s32.totalorder %v1200_v50, 3 }
  0x9d   :  { %vm218_vm11 = vcmp.lt.s32.totalorder %v1200_v50, 4  ;;  %v223_v12 = vsel %vm215_vm7, %v202_v55, %v205_v57  ;;  %v138_v43 = vsel %vm136_vm8, %v137_v10, %v1229_v53  ;;  %v227_v22 = vsel %vm215_vm7, %v205_v57, %v208_v2 }
  0x9e   :  { %v220_v20 = vsel %vm218_vm11, %v208_v2, 2102212464  ;;  %v224_v51 = vsel %vm218_vm11, %v211_v11, 920167782  ;;  %v139_v23 = vadd.s32 %v138_v43, %v134_v0  ;;  %v219_v24 = vsel %vm215_vm7, %v199_v40, %v202_v55 }
  0x9f   :  { %v225_v25 = vsel %vm217_vm10, %v208_v2, %v224_v51  ;;  %v228_v26 = vsel %vm218_vm11, %v214_v13, 1326507024  ;;  %v221_v27 = vsel %vm217_vm10, %v205_v57, %v220_v20  ;;  %v299_v31 = vsel %vm298_vm6, %v1197_v46, 0 }
  0xa0   :  { %v226_v29 = vsel %vm216_vm9, %v223_v12, %v225_v25  ;;  %v229_v30 = vsel %vm217_vm10, %v211_v11, %v228_v26  ;;  %v140_v33 = vadd.s32 536870912, %v139_v23  ;;  %v1262_v37 = vmul.f32 %v1190_v38, %v1160_v14 }
  0xa1   :  { %v230_v34 = vsel %vm216_vm9, %v227_v22, %v229_v30  ;;  %v1256_v35 = vmul.u32.u64.low %v1194_v44, %v226_v29  ;;  %v1257_v36 = vmul.u32.u64.high %v1194_v44, %v226_v29, %v1256_v35  ;;  %v1270_v46 = vmul.f32 %v1142_v5, %v1142_v5 }
  0xa2   :  { %v1265_v39 = vmul.u32.u64.low %v1194_v44, %v230_v34  ;;  %v1266_v41 = vmul.u32.u64.high %v1194_v44, %v230_v34, %v1265_v39  ;;  %v1272_v42 = vshrl.u32 %v140_v33, 30  ;;  %v222_v53 = vsel %vm216_vm9, %v219_v24, %v221_v27 }
  0xa3   :  { %v301_v55 = vand.u32 31, %v299_v31  ;;  %v19_v57 = vadd.f32 63.0, %v1185_v32  ;;  %v241_v38 = vadd.s32 1, %v1257_v36  ;;  %v294_v60 = vand.u32 8388607, %v287_v45 }
  0xa4   :  { %v142_v59 = vshll.u32 %v1272_v42, 30  ;;  %v238_v61 = vmul.u32 %v1194_v44, %v222_v53  ;;  %vm240_vm12 = vc.u32 %v1266_v41, %v1256_v35  ;;  %v394_v62 = vand.u32 2139095040, %v1262_v37 }
  0xa5   :  { %v302_v40 = vsub.s32 32, %v301_v55  ;;  %v1287_v50 = vmul.f32 %v1270_v46, %v1270_v46  ;;  %v49_v32 = vsub.s32 4, %v1137_v3  ;;  %v242_v0 = vsel %vm240_vm12, %v241_v38, %v1257_v36 }
  0xa6   :  { %v1290_v63 = vsub.s32 %v139_v23, %v142_v59  ;;  %v1294_v2 = vmul.f32 %v19_v57, %v1142_v5  ;;  %v53_v44 = vsub.s32 5, %v1137_v3  ;;  %v243_v4 = vadd.s32 %v242_v0, %v238_v61 }
  0xa7   :  { %v305_v10 = vshrl.u32 %v1113_v52, %v302_v40  ;;  %v295_v13 = vor.u32 8388608, %v294_v60  ;;  %v308_v12 = vshrl.u32 %v1114_v54, %v302_v40  ;;  %v311_v43 = vshrl.u32 %v1115_v56, %v302_v40 }
  0xa8   :  { %v145_v11 = vsub.s32 0, %v1290_v63  ;;  %v244_v20 = vadd.s32 536870912, %v243_v4  ;;  %v1301_v51 = vshrl.u32 %v299_v31, 5  ;;  %v304_v22 = vshll.u32 %v1112_v48, %v301_v55 }
  0xa9   :  { %v395_v23 = vshrl.u32 %v394_v62, 23  ;;  %v307_v25 = vshll.u32 %v1113_v52, %v301_v55  ;;  %v310_v26 = vshll.u32 %v1114_v54, %v301_v55  ;;  %v314_v27 = vshrl.u32 %v1116_v58, %v302_v40 }
  0xaa   :  { %v983_v24 = vmin.u32 %v145_v11, %v1290_v63  ;;  %v1308_v29 = vshrl.u32 %v244_v20, 30  ;;  %v306_v30 = vor.u32 %v305_v10, %v304_v22  ;;  %v313_v33 = vshll.u32 %v1115_v56, %v301_v55 }
  0xab   :  { %v317_v34 = vshrl.u32 %v1117_v1, %v302_v40  ;;  %v309_v36 = vor.u32 %v308_v12, %v307_v25  ;;  %v312_v39 = vor.u32 %v311_v43, %v310_v26  ;;  %v316_v53 = vshll.u32 %v1116_v58, %v301_v55 }
  0xac   :  { %v147_v31 = vclz %v983_v24  ;;  %v135_v57 = vadd.s32 %v1228_v49, %v1225_v47  ;;  %v246_v59 = vshll.u32 %v1308_v29, 30  ;;  %v315_v38 = vor.u32 %v314_v27, %v313_v33 }
  0xad   :  { %v1316_v60 = vshll.u32 %v295_v13, 8  ;;  %v318_v62 = vor.u32 %v317_v34, %v316_v53  ;;  %vm322_vm13 = vcmp.lt.s32.totalorder %v1301_v51, 4  ;;  %v994_v0 = vadd.s32 4294967169, %v395_v23 }
  0xae   :  { %v984_v61 = vadd.s32 4294967294, %v147_v31  ;;  %v1319_v10 = vsub.s32 %v243_v4, %v246_v59  ;;  %vm319_vm14 = vcmp.lt.s32.totalorder %v1301_v51, 1  ;;  %vm321_vm15 = vcmp.lt.s32.totalorder %v1301_v51, 3 }
  0xaf   :  { %v328_v55 = vsel %vm322_vm13, %v315_v38, 920167782  ;;  %vm320_vm1 = vcmp.lt.s32.totalorder %v1301_v51, 2  ;;  %v327_v47 = vsel %vm319_vm14, %v306_v30, %v309_v36  ;;  %v303_v13 = vshrl.u32 %v1112_v48, %v302_v40 }
  0xb0   :  { %vm985_vm0 = vcmp.lt.s32.totalorder %v984_v61, 0  ;;  %v329_v49 = vsel %vm321_vm15, %v312_v39, %v328_v55  ;;  %v249_v4 = vsub.s32 0, %v1319_v10  ;;  %v331_v12 = vsel %vm319_vm14, %v309_v36, %v312_v39 }
  0xb1   :  { %v150_v11 = vsel %vm985_vm0, 0, %v984_v61  ;;  %v324_v22 = vsel %vm322_vm13, %v312_v39, 2102212464  ;;  %v332_v23 = vsel %vm322_vm13, %v318_v62, 1326507024  ;;  %v330_v26 = vsel %vm320_vm1, %v327_v47, %v329_v49 }
  0xb2   :  { %v151_v43 = vsub.s32 32, %v150_v11  ;;  %v155_v20 = vsub.s32 4294967266, %v150_v11  ;;  %v152_v24 = vshll.u32 %v1290_v63, %v150_v11  ;;  %v987_v25 = vmin.u32 %v249_v4, %v1319_v10 }
  0xb3   :  { %v333_v40 = vsel %vm321_vm15, %v315_v38, %v332_v23  ;;  %v401_v31 = vadd.s32 1, %v994_v0  ;;  %v323_v53 = vsel %vm319_vm14, %v303_v13, %v306_v30  ;;  %v325_v63 = vsel %vm321_vm15, %v309_v36, %v324_v22 }
  0xb4   :  { %v153_v27 = vshrl.u32 %v135_v57, %v151_v43  ;;  %v156_v33 = vadd.s32 127, %v155_v20  ;;  %v334_v34 = vsel %vm320_vm1, %v331_v12, %v333_v40  ;;  %v251_v39 = vclz %v987_v25 }
  0xb5   :  { %v391_v59 = vand.u32 2147483647, %v1262_v37  ;;  %v1352_v55 = vmul.u32.u64.low %v1316_v60, %v334_v34  ;;  %v1353_v38 = vmul.u32.u64.high %v1316_v60, %v334_v34, %v1352_v55  ;;  %vm402_vm2 = vcmp.gt.s32.totalorder %v401_v31, 0 }
  0xb6   :  { %v154_v61 = vor.u32 %v153_v27, %v152_v24  ;;  %v157_v62 = vshll.u32 %v156_v33, 23  ;;  %v988_v57 = vadd.s32 4294967294, %v251_v39  ;;  %v17_v30 = vmul.f32 %v1287_v50, %v1270_v46 }
  0xb7   :  { %v1356_v47 = vmul.u32.u64.low %v1316_v60, %v330_v26  ;;  %v1357_v49 = vmul.u32.u64.high %v1316_v60, %v330_v26, %v1356_v47  ;;  %v50_v36 = vrot.slane %v1142_v5, %v49_v32  ;;  %v403_v11 = vsel %vm402_vm2, %v401_v31, 0 }
  0xb8   :  { %v158_v0 = vor.u32 4788187, %v157_v62  ;;  %v57_v4 = vsub.s32 6, %v1137_v3  ;;  %vm989_vm3 = vcmp.lt.s32.totalorder %v988_v57, 0  ;;  %v326_v13 = vsel %vm320_vm1, %v323_v53, %v325_v63 }
  0xb9   :  { %v405_v12 = vand.u32 31, %v403_v11  ;;  %v21_v43 = vadd.f32 -36.0, %v1294_v2  ;;  %v254_v22 = vsel %vm989_vm3, 0, %v988_v57  ;;  %vm344_vm4 = vc.u32 %v1353_v38, %v1356_v47 }
  0xba   :  { %v159_v20 = vand.u32 2147483647, %v158_v0  ;;  %v161_v46 = vcvt.s32.f32 %v154_v61  ;;  %v259_v50 = vsub.s32 4294967266, %v254_v22  ;;  %v345_v23 = vadd.s32 1, %v1357_v49 }
  0xbb   :  { %v398_v24 = vand.u32 8388607, %v391_v59  ;;  %v342_v51 = vmul.u32 %v1316_v60, %v326_v13  ;;  %v406_v25 = vsub.s32 32, %v405_v12  ;;  %v1379_v2 = vrot.slane %v1142_v5, %v53_v44 }
  0xbc   :  { %v1384_v26 = vrot.slane %v1142_v5, %v57_v4  ;;  %v162_v40 = vmul.f32 %v161_v46, %v159_v20  ;;  %v346_v27 = vsel %vm344_vm4, %v345_v23, %v1357_v49  ;;  %v1387_v33 = vmul.f32 %v21_v43, %v17_v30 }
  0xbd   :  { %v1390_v34 = vmul.f32 %v50_v36, %v1160_v14  ;;  %v260_v60 = vadd.s32 127, %v259_v50  ;;  %v347_v31 = vadd.s32 %v346_v27, %v342_v51  ;;  %vm81_vm5 = vcmp.lt.s32.totalorder %v1163_v15, 0 }
  0xbe   :  { %v399_v39 = vor.u32 8388608, %v398_v24  ;;  %v409_v53 = vshrl.u32 %v1113_v52, %v406_v25  ;;  %v412_v63 = vshrl.u32 %v1114_v54, %v406_v25  ;;  %v239_v5 = vadd.s32 %v1256_v35, %v1266_v41 }
  0xbf   :  { %v255_v61 = vsub.s32 32, %v254_v22  ;;  %v348_v62 = vadd.s32 536870912, %v347_v31  ;;  %v1397_v55 = vshrl.u32 %v403_v11, 5  ;;  %v163_v57 = vxor.u32 2147483648, %v162_v40 }
  0xc0   :  { %v408_v49 = vshll.u32 %v1112_v48, %v405_v12  ;;  %v411_v30 = vshll.u32 %v1113_v52, %v405_v12  ;;  %v415_v36 = vshrl.u32 %v1115_v56, %v406_v25  ;;  %v261_v0 = vshll.u32 %v260_v60, 23 }
  0xc1   :  { %v1402_v13 = vshrl.u32 %v348_v62, 30  ;;  %v417_v43 = vshll.u32 %v1115_v56, %v405_v12  ;;  %v418_v20 = vshrl.u32 %v1116_v58, %v406_v25  ;;  %v414_v41 = vshll.u32 %v1114_v54, %v405_v12 }
  0xc2   :  { %v410_v46 = vor.u32 %v409_v53, %v408_v49  ;;  %v413_v35 = vor.u32 %v412_v63, %v411_v30  ;;  %v421_v11 = vshrl.u32 %v1117_v1, %v406_v25  ;;  %vm1410_vm6 = vcmp.le.f32.partialorder %v79_v19, 0.7853982 }
  0xc3   :  { %v257_v23 = vshrl.u32 %v239_v5, %v255_v61  ;;  %v350_v24 = vshll.u32 %v1402_v13, 30  ;;  %v419_v51 = vor.u32 %v418_v20, %v417_v43  ;;  %v165_v27 = vsub.s32 4, %v1272_v42 }
  0xc4   :  { %v256_v60 = vshll.u32 %v1319_v10, %v254_v22  ;;  %v416_v53 = vor.u32 %v415_v36, %v414_v41  ;;  %v420_v63 = vshll.u32 %v1116_v58, %v405_v12  ;;  %v164_v62 = vsel %vm81_vm5, %v163_v57, %v162_v40  ;;  %v1056_v22 = vpop.eup %1055 }
  0xc5   :  { %v262_v49 = vor.u32 4788187, %v261_v0  ;;  %v1420_v30 = vsub.s32 %v347_v31, %v350_v24  ;;  %vm423_vm7 = vcmp.lt.s32.totalorder %v1397_v55, 1  ;;  %vm426_vm8 = vcmp.lt.s32.totalorder %v1397_v55, 4 }
  0xc6   :  { %v422_v19 = vor.u32 %v421_v11, %v420_v63  ;;  %v431_v5 = vsel %vm423_vm7, %v410_v46, %v413_v35  ;;  %v439_v61 = vshll.u32 %v399_v39, 8  ;;  %v258_v43 = vor.u32 %v257_v23, %v256_v60 }
  0xc7   :  { %v353_v10 = vsub.s32 0, %v1420_v30  ;;  %vm425_vm9 = vcmp.lt.s32.totalorder %v1397_v55, 3  ;;  %v432_v12 = vsel %vm426_vm8, %v419_v51, 920167782  ;;  %v167_v40 = vsel %vm1410_vm6, %v1163_v15, %v164_v62 }
  0xc8   :  { %v407_v31 = vshrl.u32 %v1112_v48, %v406_v25  ;;  %vm424_vm10 = vcmp.lt.s32.totalorder %v1397_v55, 2  ;;  %v433_v39 = vsel %vm425_vm9, %v416_v53, %v432_v12  ;;  %v263_v57 = vand.u32 2147483647, %v262_v49 }
  0xc9   :  { %v991_v36 = vmin.u32 %v353_v10, %v1420_v30  ;;  %v428_v0 = vsel %vm426_vm8, %v416_v53, 2102212464  ;;  %v434_v20 = vsel %vm424_vm10, %v431_v5, %v433_v39  ;;  %v435_v41 = vsel %vm423_vm7, %v413_v35, %v416_v53 }
  0xca   :  { %v436_v25 = vsel %vm426_vm8, %v422_v19, 1326507024  ;;  %v1446_v11 = vmul.u32.u64.low %v439_v61, %v434_v20  ;;  %v1447_v23 = vmul.u32.u64.high %v439_v61, %v434_v20, %v1446_v11  ;;  %1057 = vcosq.f32 %v167_v40 }
  0xcb   :  { %v265_v24 = vcvt.s32.f32 %v258_v43  ;;  %v269_v60 = vsub.s32 4, %v1308_v29  ;;  %v355_v63 = vclz %v991_v36  ;;  %1059 = vsinq.f32 %v167_v40 }
  0xcc   :  { %v427_v62 = vsel %vm423_vm7, %v407_v31, %v410_v46  ;;  %v429_v49 = vsel %vm425_vm9, %v413_v35, %v428_v0  ;;  %v437_v53 = vsel %vm425_vm9, %v419_v51, %v436_v25  ;;  %v498_v43 = vand.u32 2139095040, %v1390_v34 }
  0xcd   :  { %v266_v19 = vmul.f32 %v265_v24, %v263_v57  ;;  %v992_v5 = vadd.s32 4294967294, %v355_v63  ;;  %v438_v10 = vsel %vm424_vm10, %v435_v41, %v437_v53  ;;  %v166_v12 = vsel %vm81_vm5, %v165_v27, %v1272_v42 }
  0xce   :  { %vm185_vm11 = vcmp.lt.s32.totalorder %v1166_v16, 0  ;;  %v1464_v46 = vmul.u32.u64.low %v439_v61, %v438_v10  ;;  %v1465_v40 = vmul.u32.u64.high %v439_v61, %v438_v10, %v1464_v46  ;;  %v430_v35 = vsel %vm424_vm10, %v427_v62, %v429_v49 }
  0xcf   :  { %vm993_vm12 = vcmp.lt.s32.totalorder %v992_v5, 0  ;;  %v449_v51 = vadd.s32 1, %v1447_v23  ;;  %v499_v31 = vshrl.u32 %v498_v43, 23  ;;  %v1471_v39 = vadd.f32 %v1056_v22, %v1387_v33 }
  0xd0   :  { %vm1475_vm13 = vcmp.le.f32.partialorder %v183_v21, 0.7853982  ;;  %v270_v42 = vsel %vm185_vm11, %v269_v60, %v1308_v29  ;;  %v358_v27 = vsel %vm993_vm12, 0, %v992_v5  ;;  %v267_v36 = vxor.u32 2147483648, %v266_v19 }
  0xd1   :  { %v343_v55 = vadd.s32 %v1356_v47, %v1353_v38  ;;  %v359_v0 = vsub.s32 32, %v358_v27  ;;  %v363_v20 = vsub.s32 4294967266, %v358_v27  ;;  %v168_v33 = vsel %vm1410_vm6, 0, %v166_v12 }
  0xd2   :  { %v446_v22 = vmul.u32 %v439_v61, %v430_v35  ;;  %vm448_vm14 = vc.u32 %v1465_v40, %v1446_v11  ;;  %v998_v21 = vadd.s32 4294967169, %v499_v31  ;;  %v360_v41 = vshll.u32 %v1420_v30, %v358_v27 }
  0xd3   :  { %v361_v25 = vshrl.u32 %v343_v55, %v359_v0  ;;  %v364_v24 = vadd.s32 127, %v363_v20  ;;  %v450_v29 = vsel %vm448_vm14, %v449_v51, %v1447_v23  ;;  %v272_v60 = vsel %vm1475_vm13, 0, %v270_v42 }
  0xd4   :  { %v373_v38 = vsub.s32 4, %v1402_v13  ;;  %v451_v47 = vadd.s32 %v450_v29, %v446_v22  ;;  %v505_v63 = vadd.s32 1, %v998_v21  ;;  %v1495_v50 = vmul.f32 %v1379_v2, %v1160_v14 }
  0xd5   :  { %v268_v61 = vsel %vm185_vm11, %v267_v36, %v266_v19  ;;  %v362_v62 = vor.u32 %v361_v25, %v360_v41  ;;  %v365_v30 = vshll.u32 %v364_v24, 23  ;;  %v172_v49 = vadd.s32 3, %v168_v33 }
  0xd6   :  { %v452_v53 = vadd.s32 536870912, %v451_v47  ;;  %v495_v23 = vand.u32 2147483647, %v1390_v34  ;;  %vm506_vm15 = vcmp.gt.s32.totalorder %v505_v63, 0  ;;  %v276_v5 = vadd.s32 3, %v272_v60 }
  0xd7   :  { %vm289_vm0 = vcmp.lt.s32.totalorder %v1169_v17, 0  ;;  %v366_v10 = vor.u32 4788187, %v365_v30  ;;  %v507_v43 = vsel %vm506_vm15, %v505_v63, 0  ;;  %v1501_v12 = vpop.eup %1057  ;;  %v271_v2 = vsel %vm1475_vm13, %v1166_v16, %v268_v61 }
  0xd8   :  { %v1509_v19 = vsel %vm289_vm0, %v373_v38, %v1402_v13  ;;  %v1511_v46 = vshrl.u32 %v452_v53, 30  ;;  %v509_v35 = vand.u32 31, %v507_v43  ;;  %v1513_v51 = vpop.eup %1059  ;;  %v1517_v31 = vmul.f32 %v1384_v26, %v1160_v14 }
  0xd9   :  { %vm1521_vm1 = vcmp.le.f32.partialorder %v287_v45, 0.7853982  ;;  %v367_v57 = vand.u32 2147483647, %v366_v10  ;;  %v369_v27 = vcvt.s32.f32 %v362_v62  ;;  %v1525_v36 = vand.u32 3, %v172_v49 }
  0xda   :  { %v454_v13 = vshll.u32 %v1511_v46, 30  ;;  %v502_v55 = vand.u32 8388607, %v495_v23  ;;  %v510_v0 = vsub.s32 32, %v509_v35  ;;  %1061 = vcosq.f32 %v271_v2 }
  0xdb   :  { %v1530_v20 = vand.u32 3, %v276_v5  ;;  %v370_v14 = vmul.f32 %v369_v27, %v367_v57  ;;  %v376_v45 = vsel %vm1521_vm1, 0, %v1509_v19  ;;  %v176_v26 = vxor.u32 2147483648, %v1513_v51 }
  0xdc   :  { %v179_v33 = vxor.u32 2147483648, %v1501_v12  ;;  %1063 = vsinq.f32 %v271_v2  ;;  %v1537_v22 = vsub.s32 %v451_v47, %v454_v13  ;;  %v447_v41 = vadd.s32 %v1446_v11, %v1465_v40 }
  0xdd   :  { %v371_v21 = vxor.u32 2147483648, %v370_v14  ;;  %v513_v25 = vshrl.u32 %v1113_v52, %v510_v0  ;;  %v599_v24 = vand.u32 2147483647, %v1495_v50  ;;  %v503_v60 = vor.u32 8388608, %v502_v55 }
  0xde   :  { %v457_v29 = vsub.s32 0, %v1537_v22  ;;  %v516_v38 = vshrl.u32 %v1114_v54, %v510_v0  ;;  %v602_v63 = vand.u32 2139095040, %v1495_v50  ;;  %v512_v47 = vshll.u32 %v1112_v48, %v509_v35 }
  0xdf   :  { %v372_v61 = vsel %vm289_vm0, %v371_v21, %v370_v14  ;;  %v515_v62 = vshll.u32 %v1113_v52, %v509_v35  ;;  %v519_v11 = vshrl.u32 %v1115_v56, %v510_v0  ;;  %v508_v49 = vshrl.u32 %v507_v43, 5 }
  0xe0   :  { %v375_v40 = vsel %vm1521_vm1, %v1169_v17, %v372_v61  ;;  %v995_v30 = vmin.u32 %v457_v29, %v1537_v22  ;;  %v518_v53 = vshll.u32 %v1114_v54, %v509_v35  ;;  %v514_v5 = vor.u32 %v513_v25, %v512_v47 }
  0xe1   :  { %v517_v10 = vor.u32 %v516_v38, %v515_v62  ;;  %v521_v2 = vshll.u32 %v1115_v56, %v509_v35  ;;  %v522_v57 = vshrl.u32 %v1116_v58, %v510_v0  ;;  %v1558_v55 = vshll.u32 %v503_v60, 8 }
  0xe2   :  { %v459_v27 = vclz %v995_v30  ;;  %v520_v13 = vor.u32 %v519_v11, %v518_v53  ;;  %v603_v14 = vshrl.u32 %v602_v63, 23  ;;  %1065 = vcosq.f32 %v375_v40 }
  0xe3   :  { %v523_v21 = vor.u32 %v522_v57, %v521_v2  ;;  %v524_v61 = vshll.u32 %v1116_v58, %v509_v35  ;;  %v525_v29 = vshrl.u32 %v1117_v1, %v510_v0  ;;  %vm175_vm2 = vcmp.eq.s32.totalorder %v1525_v36, 0 }
  0xe4   :  { %vm178_vm3 = vcmp.eq.s32.totalorder %v1525_v36, 2  ;;  %1067 = vsinq.f32 %v375_v40  ;;  %v996_v43 = vadd.s32 4294967294, %v459_v27  ;;  %v511_v25 = vshrl.u32 %v1112_v48, %v510_v0 }
  0xe5   :  { %vm527_vm4 = vcmp.lt.s32.totalorder %v508_v49, 1  ;;  %v526_v38 = vor.u32 %v525_v29, %v524_v61  ;;  %vm528_vm5 = vcmp.lt.s32.totalorder %v508_v49, 2  ;;  %vm530_vm6 = vcmp.lt.s32.totalorder %v508_v49, 4 }
  0xe6   :  { %v535_v60 = vsel %vm527_vm4, %v514_v5, %v517_v10  ;;  %vm997_vm7 = vcmp.lt.s32.totalorder %v996_v43, 0  ;;  %vm529_vm8 = vcmp.lt.s32.totalorder %v508_v49, 3  ;;  %v532_v63 = vsel %vm530_vm6, %v520_v13, 2102212464 }
  0xe7   :  { %v536_v35 = vsel %vm530_vm6, %v523_v21, 920167782  ;;  %vm393_vm9 = vcmp.lt.s32.totalorder %v1262_v37, 0  ;;  %v462_v47 = vsel %vm997_vm7, 0, %v996_v43  ;;  %v539_v11 = vsel %vm527_vm4, %v517_v10, %v520_v13  ;;  %v1062_v30 = vpop.eup %1061 }
  0xe8   :  { %v537_v62 = vsel %vm529_vm8, %v520_v13, %v536_v35  ;;  %v540_v40 = vsel %vm530_vm6, %v526_v38, 1326507024  ;;  %v463_v0 = vsub.s32 32, %v462_v47  ;;  %v467_v53 = vsub.s32 4294967266, %v462_v47 }
  0xe9   :  { %v531_v2 = vsel %vm527_vm4, %v511_v25, %v514_v5  ;;  %v538_v57 = vsel %vm528_vm5, %v535_v60, %v537_v62  ;;  %v1064_v27 = vpop.eup %1063  ;;  %vm174_vm10 = vcmp.lt.s32.totalorder %v1525_v36, 2  ;;  %v533_v61 = vsel %vm529_vm8, %v517_v10, %v532_v63 }
  0xea   :  { %v541_v29 = vsel %vm529_vm8, %v523_v21, %v540_v40  ;;  %v1575_v43 = vmul.u32.u64.low %v1558_v55, %v538_v57  ;;  %v1576_v35 = vmul.u32.u64.high %v1558_v55, %v538_v57, %v1575_v43  ;;  %vm1581_vm11 = vcmp.le.f32.partialorder %v391_v59, 0.7853982 }
  0xeb   :  { %v465_v5 = vshrl.u32 %v447_v41, %v463_v0  ;;  %v468_v25 = vadd.s32 127, %v467_v53  ;;  %v542_v38 = vsel %vm528_vm5, %v539_v11, %v541_v29  ;;  %v1002_v60 = vadd.s32 4294967169, %v603_v14 }
  0xec   :  { %v380_v10 = vadd.s32 3, %v376_v45  ;;  %v477_v21 = vsub.s32 4, %v1511_v46  ;;  %v1592_v63 = vmul.u32.u64.low %v1558_v55, %v542_v38  ;;  %v1593_v62 = vmul.u32.u64.high %v1558_v55, %v542_v38, %v1592_v63 }
  0xed   :  { %v464_v59 = vshll.u32 %v1537_v22, %v462_v47  ;;  %v469_v40 = vshll.u32 %v468_v25, 23  ;;  %v534_v41 = vsel %vm528_vm5, %v531_v2, %v533_v61  ;;  %v609_v0 = vadd.s32 1, %v1002_v60 }
  0xee   :  { %v177_v42 = vsel %vm175_vm2, %v1501_v12, %v176_v26  ;;  %v180_v19 = vsel %vm178_vm3, %v179_v33, %v1513_v51  ;;  %v553_v45 = vadd.s32 1, %v1576_v35  ;;  %v606_v22 = vand.u32 8388607, %v599_v24 }
  0xef   :  { %vm278_vm12 = vcmp.lt.s32.totalorder %v1530_v20, 2  ;;  %v283_v49 = vxor.u32 2147483648, %v1062_v30  ;;  %v466_v14 = vor.u32 %v465_v5, %v464_v59  ;;  %v470_v47 = vor.u32 4788187, %v469_v40  ;;  %v1614_v53 = vpop.eup %1065 }
  0xf0   :  { %vm610_vm13 = vcmp.gt.s32.totalorder %v609_v0, 0  ;;  %v280_v11 = vxor.u32 2147483648, %v1064_v27  ;;  %v550_v26 = vmul.u32 %v1558_v55, %v534_v41  ;;  %vm552_vm14 = vc.u32 %v1593_v62, %v1575_v43 }
  0xf1   :  { %v611_v12 = vsel %vm610_vm13, %v609_v0, 0  ;;  %vm279_vm15 = vcmp.eq.s32.totalorder %v1530_v20, 0  ;;  %v471_v51 = vand.u32 2147483647, %v470_v47  ;;  %v478_v33 = vsel %vm393_vm9, %v477_v21, %v1511_v46  ;;  %v1621_v57 = vpop.eup %1067 }
  0xf2   :  { %v554_v2 = vsel %vm552_vm14, %v553_v45, %v1576_v35  ;;  %vm282_vm0 = vcmp.eq.s32.totalorder %v1530_v20, 2  ;;  %v1624_v55 = vand.u32 3, %v380_v10  ;;  %v613_v29 = vand.u32 31, %v611_v12 }
  0xf3   :  { %v555_v61 = vadd.s32 %v554_v2, %v550_v26  ;;  %v1628_v5 = vsel %vm174_vm10, %v177_v42, %v180_v19  ;;  %v284_v25 = vsel %vm282_vm0, %v283_v49, %v1064_v27  ;;  %v473_v38 = vcvt.s32.f32 %v466_v14 }
  0xf4   :  { %v607_v60 = vor.u32 8388608, %v606_v22  ;;  %v281_v63 = vsel %vm279_vm15, %v1062_v30, %v280_v11  ;;  %v480_v46 = vsel %vm1581_vm11, 0, %v478_v33  ;;  %v614_v21 = vsub.s32 32, %v613_v29 }
  0xf5   :  { %v556_v35 = vadd.s32 536870912, %v555_v61  ;;  %v474_v59 = vmul.f32 %v473_v38, %v471_v51  ;;  %v1632_v40 = vshrl.u32 %v611_v12, 5  ;;  %v616_v10 = vshll.u32 %v1112_v48, %v613_v29 }
  0xf6   :  { %v706_v41 = vand.u32 2139095040, %v1517_v31  ;;  %v617_v36 = vshrl.u32 %v1113_v52, %v614_v21  ;;  %v619_v27 = vshll.u32 %v1113_v52, %v613_v29  ;;  %v620_v42 = vshrl.u32 %v1114_v54, %v614_v21 }
  0xf7   :  { %v557_v0 = vshrl.u32 %v556_v35, 30  ;;  %vm497_vm1 = vcmp.lt.s32.totalorder %v1390_v34, 0  ;;  %v622_v30 = vshll.u32 %v1114_v54, %v613_v29  ;;  %v623_v19 = vshrl.u32 %v1115_v56, %v614_v21 }
  0xf8   :  { %v625_v45 = vshll.u32 %v1115_v56, %v613_v29  ;;  %v626_v22 = vshrl.u32 %v1116_v58, %v614_v21  ;;  %v1646_v49 = vsel %vm278_vm12, %v281_v63, %v284_v25  ;;  %v1648_v14 = vadd.s32 3, %v480_v46 }
  0xf9   :  { %v558_v47 = vshll.u32 %v557_v0, 30  ;;  %v1650_v11 = vshll.u32 %v607_v60, 8  ;;  %vm386_vm2 = vcmp.eq.s32.totalorder %v1624_v55, 2  ;;  %v618_v26 = vor.u32 %v617_v36, %v616_v10 }
  0xfa   :  { %v621_v12 = vor.u32 %v620_v42, %v619_v27  ;;  %v624_v51 = vor.u32 %v623_v19, %v622_v30  ;;  %v627_v33 = vor.u32 %v626_v22, %v625_v45  ;;  %vm383_vm3 = vcmp.eq.s32.totalorder %v1624_v55, 0 }
  0xfb   :  { %v384_v2 = vxor.u32 2147483648, %v1621_v57  ;;  %v387_v38 = vxor.u32 2147483648, %v1614_v53  ;;  %v1656_v20 = vsub.s32 %v555_v61, %v558_v47  ;;  %v707_v25 = vshrl.u32 %v706_v41, 23 }
  0xfc   :  { %v475_v63 = vxor.u32 2147483648, %v474_v59  ;;  %vm1660_vm4 = vcmp.le.f32.partialorder %v495_v23, 0.7853982  ;;  %v628_v46 = vshll.u32 %v1116_v58, %v613_v29  ;;  %v629_v35 = vshrl.u32 %v1117_v1, %v614_v21 }
  0xfd   :  { %vm631_vm5 = vcmp.lt.s32.totalorder %v1632_v40, 1  ;;  %v561_v10 = vsub.s32 0, %v1656_v20  ;;  %v581_v36 = vsub.s32 4, %v557_v0  ;;  %vm633_vm6 = vcmp.lt.s32.totalorder %v1632_v40, 3 }
  0xfe   :  { %vm634_vm7 = vcmp.lt.s32.totalorder %v1632_v40, 4  ;;  %vm382_vm8 = vcmp.lt.s32.totalorder %v1624_v55, 2  ;;  %v630_v61 = vor.u32 %v629_v35, %v628_v46  ;;  %v639_v41 = vsel %vm631_vm5, %v618_v26, %v621_v12 }
  0xff   :  { %v636_v23 = vsel %vm634_vm7, %v624_v51, 2102212464  ;;  %v640_v27 = vsel %vm634_vm7, %v627_v33, 920167782  ;;  %v999_v29 = vmin.u32 %v561_v10, %v1656_v20  ;;  %v615_v42 = vshrl.u32 %v1112_v48, %v614_v21 }
 0x100   :  { %vm632_vm10 = vcmp.lt.s32.totalorder %v1632_v40, 2  ;;  %v641_v30 = vsel %vm633_vm6, %v624_v51, %v640_v27  ;;  %v476_v19 = vsel %vm393_vm9, %v475_v63, %v474_v59  ;;  %v643_v22 = vsel %vm631_vm5, %v621_v12, %v624_v51 }
 0x101   :  { %v642_v45 = vsel %vm632_vm10, %v639_v41, %v641_v30  ;;  %v644_v47 = vsel %vm634_vm7, %v630_v61, 1326507024  ;;  %v563_v46 = vclz %v999_v29  ;;  %v582_v35 = vsel %vm497_vm1, %v581_v36, %v557_v0 }
 0x102   :  { %v635_v21 = vsel %vm631_vm5, %v615_v42, %v618_v26  ;;  %v637_v10 = vsel %vm633_vm6, %v621_v12, %v636_v23  ;;  %vm171_vm12 = vweird.f32 %v1163_v15  ;;  %v645_v59 = vsel %vm633_vm6, %v627_v33, %v644_v47 }
 0x103   :  { %v1694_v63 = vmul.u32.u64.low %v1650_v11, %v642_v45  ;;  %v1695_v41 = vmul.u32.u64.high %v1650_v11, %v642_v45, %v1694_v63  ;;  %v1006_v51 = vadd.s32 4294967169, %v707_v25  ;;  %vm275_vm9 = vweird.f32 %v1166_v16 }
 0x104   :  { %v388_v0 = vsel %vm386_vm2, %v387_v38, %v1621_v57  ;;  %v1000_v26 = vadd.s32 4294967294, %v563_v46  ;;  %v646_v12 = vsel %vm632_vm10, %v643_v22, %v645_v59  ;;  %v703_v36 = vand.u32 2147483647, %v1517_v31 }
 0x105   :  { %v385_v33 = vsel %vm383_vm3, %v1614_v53, %v384_v2  ;;  %v1709_v61 = vmul.u32.u64.low %v1650_v11, %v646_v12  ;;  %v1710_v23 = vmul.u32.u64.high %v1650_v11, %v646_v12, %v1709_v61  ;;  %v713_v25 = vadd.s32 1, %v1006_v51 }
 0x106   :  { %v479_v27 = vsel %vm1581_vm11, %v1262_v37, %v476_v19  ;;  %vm1001_vm13 = vcmp.lt.s32.totalorder %v1000_v26, 0  ;;  %v584_v57 = vsel %vm1660_vm4, 0, %v582_v35  ;;  %v638_v38 = vsel %vm632_vm10, %v635_v21, %v637_v10 }
 0x107   :  { %v551_v29 = vadd.s32 %v1575_v43, %v1593_v62  ;;  %v566_v53 = vsel %vm1001_vm13, 0, %v1000_v26  ;;  %v657_v2 = vadd.s32 1, %v1695_v41  ;;  %vm714_vm14 = vcmp.gt.s32.totalorder %v713_v25, 0 }
 0x108   :  { %v389_v42 = vsel %vm382_vm8, %v385_v33, %v388_v0  ;;  %v567_v30 = vsub.s32 32, %v566_v53  ;;  %v571_v13 = vsub.s32 4294967266, %v566_v53  ;;  %v715_v19 = vsel %vm714_vm14, %v713_v25, 0 }
 0x109   :  { %1069 = vcosq.f32 %v479_v27  ;;  %v588_v45 = vadd.s32 3, %v584_v57  ;;  %v654_v22 = vmul.u32 %v1650_v11, %v638_v38  ;;  %vm656_vm11 = vc.u32 %v1710_v23, %v1694_v63 }
 0x10a   :  { %v568_v40 = vshll.u32 %v1656_v20, %v566_v53  ;;  %v569_v43 = vshrl.u32 %v551_v29, %v567_v30  ;;  %v572_v62 = vadd.s32 127, %v571_v13  ;;  %v658_v47 = vsel %vm656_vm11, %v657_v2, %v1695_v41 }
 0x10b   :  { %1071 = vsinq.f32 %v479_v27  ;;  %v659_v46 = vadd.s32 %v658_v47, %v654_v22  ;;  %v1731_v55 = vand.u32 8388607, %v703_v36  ;;  %v717_v35 = vand.u32 31, %v715_v19 }
 0x10c   :  { %v1736_v11 = vsel %vm171_vm12, nan, %v1628_v5  ;;  %vm379_vm15 = vweird.f32 %v1169_v17  ;;  %v570_v21 = vor.u32 %v569_v43, %v568_v40  ;;  %v573_v20 = vshll.u32 %v572_v62, 23 }
 0x10d   :  { %v1742_v10 = vsel %vm275_vm9, nan, %v1646_v49  ;;  %v1745_v59 = vand.u32 3, %v1648_v14  ;;  %v660_v41 = vadd.s32 536870912, %v659_v46  ;;  %v718_v51 = vsub.s32 32, %v717_v35 }
 0x10e   :  { %v1747_v0 = vsel %vm379_vm15, nan, %v389_v42  ;;  %v574_v26 = vor.u32 4788187, %v573_v20  ;;  %v1749_v15 = vand.u32 3, %v588_v45  ;;  %v807_v5 = vand.u32 2147483647, %v1172_v18 }
 0x10f   :  { %v1752_v17 = vshrl.u32 %v660_v41, 30  ;;  %v711_v12 = vor.u32 8388608, %v1731_v55  ;;  %v721_v16 = vshrl.u32 %v1113_v52, %v718_v51  ;;  %v724_v49 = vshrl.u32 %v1114_v54, %v718_v51 }
 0x110   :  { %v575_v33 = vand.u32 2147483647, %v574_v26  ;;  %v577_v14 = vcvt.s32.f32 %v570_v21  ;;  %v726_v61 = vshll.u32 %v1114_v54, %v717_v35  ;;  %v727_v25 = vshrl.u32 %v1115_v56, %v718_v51 }
 0x111   :  { %v662_v27 = vshll.u32 %v1752_v17, 30  ;;  %v716_v57 = vshrl.u32 %v715_v19, 5  ;;  %v720_v38 = vshll.u32 %v1112_v48, %v717_v35  ;;  %v723_v29 = vshll.u32 %v1113_v52, %v717_v35 }
 0x112   :  { %v578_v53 = vmul.f32 %v577_v14, %v575_v33  ;;  %v728_v2 = vor.u32 %v727_v25, %v726_v61  ;;  %v729_v42 = vshll.u32 %v1115_v56, %v717_v35  ;;  %v730_v30 = vshrl.u32 %v1116_v58, %v718_v51 }
 0x113   :  { %v1764_v13 = vsub.s32 %v659_v46, %v662_v27  ;;  %v722_v45 = vor.u32 %v721_v16, %v720_v38  ;;  %v725_v22 = vor.u32 %v724_v49, %v723_v29  ;;  %v733_v40 = vshrl.u32 %v1117_v1, %v718_v51 }
 0x114   :  { %v579_v43 = vxor.u32 2147483648, %v578_v53  ;;  %v731_v62 = vor.u32 %v730_v30, %v729_v42  ;;  %v732_v19 = vshll.u32 %v1116_v58, %v717_v35  ;;  %v810_v47 = vand.u32 2139095040, %v1172_v18 }
 0x115   :  { %vm490_vm0 = vcmp.eq.s32.totalorder %v1745_v59, 2  ;;  %v665_v55 = vsub.s32 0, %v1764_v13  ;;  %v719_v21 = vshrl.u32 %v1112_v48, %v718_v51  ;;  %vm735_vm2 = vcmp.lt.s32.totalorder %v716_v57, 1 }
 0x116   :  { %vm738_vm3 = vcmp.lt.s32.totalorder %v716_v57, 4  ;;  %v1070_v46 = vpop.eup %1069  ;;  %vm487_vm5 = vcmp.eq.s32.totalorder %v1745_v59, 0  ;;  %v580_v20 = vsel %vm497_vm1, %v579_v43, %v578_v53  ;;  %v734_v41 = vor.u32 %v733_v40, %v732_v19 }
 0x117   :  { %v740_v26 = vsel %vm738_vm3, %v728_v2, 2102212464  ;;  %v744_v35 = vsel %vm738_vm3, %v731_v62, 920167782  ;;  %v583_v16 = vsel %vm1660_vm4, %v1390_v34, %v580_v20  ;;  %v1003_v49 = vmin.u32 %v665_v55, %v1764_v13 }
 0x118   :  { %vm737_vm6 = vcmp.lt.s32.totalorder %v716_v57, 3  ;;  %v743_v51 = vsel %vm735_vm2, %v722_v45, %v725_v22  ;;  %v1072_v33 = vpop.eup %1071  ;;  %1073 = vcosq.f32 %v583_v16  ;;  %vm736_vm7 = vcmp.lt.s32.totalorder %v716_v57, 2 }
 0x119   :  { %v739_v14 = vsel %vm735_vm2, %v719_v21, %v722_v45  ;;  %v745_v61 = vsel %vm737_vm6, %v728_v2, %v744_v35  ;;  %vm486_vm1 = vcmp.lt.s32.totalorder %v1745_v59, 2  ;;  %1075 = vsinq.f32 %v583_v16 }
 0x11a   :  { %vm601_vm8 = vcmp.lt.s32.totalorder %v1495_v50, 0  ;;  %v667_v25 = vclz %v1003_v49  ;;  %v741_v60 = vsel %vm737_vm6, %v725_v22, %v740_v26  ;;  %v747_v27 = vsel %vm735_vm2, %v725_v22, %v728_v2 }
 0x11b   :  { %v491_v38 = vxor.u32 2147483648, %v1070_v46  ;;  %v746_v29 = vsel %vm736_vm7, %v743_v51, %v745_v61  ;;  %v748_v53 = vsel %vm738_vm3, %v734_v41, 1326507024  ;;  %v751_v42 = vshll.u32 %v711_v12, 8 }
 0x11c   :  { %v488_v30 = vxor.u32 2147483648, %v1072_v33  ;;  %v1004_v45 = vadd.s32 4294967294, %v667_v25  ;;  %v749_v40 = vsel %vm737_vm6, %v731_v62, %v748_v53  ;;  %v811_v43 = vshrl.u32 %v810_v47, 23 }
 0x11d   :  { %v742_v19 = vsel %vm736_vm7, %v739_v14, %v741_v60  ;;  %v750_v55 = vsel %vm736_vm7, %v747_v27, %v749_v40  ;;  %v1793_v21 = vmul.u32.u64.low %v751_v42, %v746_v29  ;;  %v1794_v20 = vmul.u32.u64.high %v751_v42, %v746_v29, %v1793_v21 }
 0x11e   :  { %vm483_vm4 = vweird.f32 %v1262_v37  ;;  %vm1800_vm10 = vcmp.le.f32.partialorder %v599_v24, 0.7853982  ;;  %vm1005_vm12 = vcmp.lt.s32.totalorder %v1004_v45, 0  ;;  %v1010_v62 = vadd.s32 4294967169, %v811_v43 }
 0x11f   :  { %v1804_v12 = vmul.u32.u64.low %v751_v42, %v750_v55  ;;  %v1805_v22 = vmul.u32.u64.high %v751_v42, %v750_v55, %v1804_v12  ;;  %v492_v57 = vsel %vm490_vm0, %v491_v38, %v1072_v33  ;;  %v655_v47 = vadd.s32 %v1694_v63, %v1710_v23 }
 0x120   :  { %v670_v41 = vsel %vm1005_vm12, 0, %v1004_v45  ;;  %v685_v26 = vsub.s32 4, %v1752_v17  ;;  %v489_v24 = vsel %vm487_vm5, %v1070_v46, %v488_v30  ;;  %v817_v49 = vadd.s32 1, %v1010_v62 }
 0x121   :  { %v671_v35 = vsub.s32 32, %v670_v41  ;;  %v675_v16 = vsub.s32 4294967266, %v670_v41  ;;  %v758_v51 = vmul.u32 %v751_v42, %v742_v19  ;;  %v761_v14 = vadd.s32 1, %v1794_v20 }
 0x122   :  { %v814_v61 = vand.u32 8388607, %v807_v5  ;;  %v915_v33 = vrot.slane %v1471_v39, %v33_v6  ;;  %v672_v63 = vshll.u32 %v1764_v13, %v670_v41  ;;  %vm760_vm9 = vc.u32 %v1805_v22, %v1793_v21 }
 0x123   :  { %v673_v23 = vshrl.u32 %v655_v47, %v671_v35  ;;  %v676_v25 = vadd.s32 127, %v675_v16  ;;  %v493_v46 = vsel %vm486_vm1, %v489_v24, %v492_v57  ;;  %v1828_v60 = vsel %vm601_vm8, %v685_v26, %v1752_v17 }
 0x124   :  { %v762_v27 = vsel %vm760_vm9, %v761_v14, %v1794_v20  ;;  %vm818_vm13 = vcmp.gt.s32.totalorder %v817_v49, 0  ;;  %vm590_vm14 = vcmp.lt.s32.totalorder %v1749_v15, 2  ;;  %vm591_vm11 = vcmp.eq.s32.totalorder %v1749_v15, 0 }
 0x125   :  { %v674_v38 = vor.u32 %v673_v23, %v672_v63  ;;  %v677_v6 = vshll.u32 %v676_v25, 23  ;;  %v763_v29 = vadd.s32 %v762_v27, %v758_v51  ;;  %v819_v13 = vsel %vm818_vm13, %v817_v49, 0  ;;  %v1074_v59 = vpop.eup %1073 }
 0x126   :  { %v815_v53 = vor.u32 8388608, %v814_v61  ;;  %v821_v42 = vand.u32 31, %v819_v13  ;;  %vm594_vm15 = vcmp.eq.s32.totalorder %v1749_v15, 2  ;;  %v952_v17 = vmul.f32 %v915_v33, %v1736_v11  ;;  %v1076_v40 = vpop.eup %1075 }
 0x127   :  { %v678_v30 = vor.u32 4788187, %v677_v6  ;;  %v764_v45 = vadd.s32 536870912, %v763_v29  ;;  %v1837_v43 = vsel %vm483_vm4, nan, %v493_v46  ;;  %v595_v19 = vxor.u32 2147483648, %v1074_v59 }
 0x128   :  { %v688_v55 = vsel %vm1800_vm10, 0, %v1828_v60  ;;  %v822_v20 = vsub.s32 32, %v821_v42  ;;  %vm587_vm0 = vweird.f32 %v1390_v34  ;;  %v592_v12 = vxor.u32 2147483648, %v1076_v40  ;;  %960 = vst [vmem:[#allocation2] sm:$0xff] %v952_v17 }
 0x129   :  { %v679_v62 = vand.u32 2147483647, %v678_v30  ;;  %v681_v57 = vcvt.s32.f32 %v674_v38  ;;  %v1843_v47 = vshrl.u32 %v764_v45, 30  ;;  %v596_v11 = vsel %vm594_vm15, %v595_v19, %v1076_v40 }
 0x12a   :  { %v825_v41 = vshrl.u32 %v1113_v52, %v822_v20  ;;  %v1846_v37 = vshll.u32 %v815_v53, 8  ;;  %v919_v26 = vrot.slane %v1471_v39, %v37_v7  ;;  %v593_v24 = vsel %vm591_vm11, %v1074_v59, %v592_v12 }
 0x12b   :  { %v682_v35 = vmul.f32 %v681_v57, %v679_v62  ;;  %v766_v16 = vshll.u32 %v1843_v47, 30  ;;  %v828_v49 = vshrl.u32 %v1114_v54, %v822_v20  ;;  %v820_v51 = vshrl.u32 %v819_v13, 5 }
 0x12c   :  { %v824_v14 = vshll.u32 %v1112_v48, %v821_v42  ;;  %v831_v61 = vshrl.u32 %v1115_v56, %v822_v20  ;;  %v923_v33 = vrot.slane %v1471_v39, %v41_v8  ;;  %v827_v7 = vshll.u32 %v1113_v52, %v821_v42 }
 0x12d   :  { %v683_v63 = vxor.u32 2147483648, %v682_v35  ;;  %v1860_v23 = vsub.s32 %v763_v29, %v766_v16  ;;  %v830_v25 = vshll.u32 %v1114_v54, %v821_v42  ;;  %v597_v46 = vsel %vm590_vm14, %v593_v24, %v596_v11 }
 0x12e   :  { %v826_v27 = vor.u32 %v825_v41, %v824_v14  ;;  %v833_v38 = vshll.u32 %v1115_v56, %v821_v42  ;;  %v834_v6 = vshrl.u32 %v1116_v58, %v822_v20  ;;  %v829_v53 = vor.u32 %v828_v49, %v827_v7 }
 0x12f   :  { %v684_v13 = vsel %vm601_vm8, %v683_v63, %v682_v35  ;;  %v769_v8 = vsub.s32 0, %v1860_v23  ;;  %v832_v29 = vor.u32 %v831_v61, %v830_v25  ;;  %v836_v15 = vshll.u32 %v1116_v58, %v821_v42 }
 0x130   :  { %v687_v52 = vsel %vm1800_vm10, %v1495_v50, %v684_v13  ;;  %v835_v54 = vor.u32 %v834_v6, %v833_v38  ;;  %v837_v59 = vshrl.u32 %v1117_v1, %v822_v20  ;;  %v927_v30 = vrot.slane %v1471_v39, %v45_v28 }
 0x131   :  { %1077 = vcosq.f32 %v687_v52  ;;  %v1007_v56 = vmin.u32 %v769_v8, %v1860_v23  ;;  %v931_v45 = vrot.slane %v1471_v39, %v49_v32  ;;  %v598_v17 = vsel %vm587_vm0, nan, %v597_v46 }
 0x132   :  { %1079 = vsinq.f32 %v687_v52  ;;  %v823_v40 = vshrl.u32 %v1112_v48, %v822_v20  ;;  %v838_v58 = vor.u32 %v837_v59, %v836_v15  ;;  %vm839_vm2 = vcmp.lt.s32.totalorder %v820_v51, 1 }
 0x133   :  { %v771_v42 = vclz %v1007_v56  ;;  %vm840_vm3 = vcmp.lt.s32.totalorder %v820_v51, 2  ;;  %vm842_vm5 = vcmp.lt.s32.totalorder %v820_v51, 4  ;;  %vm841_vm6 = vcmp.lt.s32.totalorder %v820_v51, 3 }
 0x134   :  { %v844_v1 = vsel %vm842_vm5, %v832_v29, 2102212464  ;;  %v847_v19 = vsel %vm839_vm2, %v826_v27, %v829_v53  ;;  %v848_v12 = vsel %vm842_vm5, %v835_v54, 920167782  ;;  %v843_v62 = vsel %vm839_vm2, %v823_v40, %v826_v27 }
 0x135   :  { %v1008_v28 = vadd.s32 4294967294, %v771_v42  ;;  %v849_v57 = vsel %vm841_vm6, %v832_v29, %v848_v12  ;;  %v851_v11 = vsel %vm839_vm2, %v829_v53, %v832_v29  ;;  %v845_v32 = vsel %vm841_vm6, %v829_v53, %v844_v1 }
 0x136   :  { %v850_v34 = vsel %vm840_vm3, %v847_v19, %v849_v57  ;;  %v852_v41 = vsel %vm842_vm5, %v838_v58, 1326507024  ;;  %v953_v24 = vmul.f32 %v919_v26, %v1742_v10  ;;  %v692_v16 = vadd.s32 3, %v688_v55 }
 0x137   :  { %vm1009_vm7 = vcmp.lt.s32.totalorder %v1008_v28, 0  ;;  %v853_v48 = vsel %vm841_vm6, %v835_v54, %v852_v41  ;;  %v1889_v20 = vmul.u32.u64.low %v1846_v37, %v850_v34  ;;  %v1890_v35 = vmul.u32.u64.high %v1846_v37, %v850_v34, %v1889_v20 }
 0x138   :  { %v774_v49 = vsel %vm1009_vm7, 0, %v1008_v28  ;;  %v854_v14 = vsel %vm840_vm3, %v851_v11, %v853_v48  ;;  %v954_v61 = vmul.f32 %v923_v33, %v1747_v0  ;;  %961 = vst [vmem:[#allocation2 + $0x8] sm:$0xff] %v953_v24  ;;  %v759_v10 = vadd.s32 %v1793_v21, %v1805_v22 }
 0x139   :  { %v775_v26 = vsub.s32 32, %v774_v49  ;;  %v779_v63 = vsub.s32 4294967266, %v774_v49  ;;  %v955_v7 = vmul.f32 %v927_v30, %v1837_v43  ;;  %v846_v25 = vsel %vm840_vm3, %v843_v62, %v845_v32 }
 0x13a   :  { %v1904_v2 = vmul.u32.u64.low %v1846_v37, %v854_v14  ;;  %v1905_v46 = vmul.u32.u64.high %v1846_v37, %v854_v14, %v1904_v2  ;;  %v956_v60 = vmul.f32 %v931_v45, %v598_v17  ;;  %962 = vst [vmem:[#allocation2 + $0x10] sm:$0xff] %v954_v61  ;;  %v776_v55 = vshll.u32 %v1860_v23, %v774_v49 }
 0x13b   :  { %v777_v27 = vshrl.u32 %v759_v10, %v775_v26  ;;  %v780_v0 = vadd.s32 127, %v779_v63  ;;  %v865_v33 = vadd.s32 1, %v1890_v35  ;;  %963 = vst [vmem:[#allocation2 + $0x18] sm:$0xff] %v955_v7  ;;  %v693_v21 = vand.u32 3, %v692_v16 }
 0x13c   :  { %964 = vst [vmem:[#allocation2 + $0x20] sm:$0xff] %v956_v60  ;;  %v862_v51 = vmul.u32 %v1846_v37, %v846_v25  ;;  %vm864_vm1 = vc.u32 %v1905_v46, %v1889_v20  ;;  %v935_v59 = vrot.slane %v1471_v39, %v53_v44  ;;  %vm691_vm12 = vweird.f32 %v1495_v50 }
 0x13d   :  { %v778_v22 = vor.u32 %v777_v27, %v776_v55  ;;  %v781_v38 = vshll.u32 %v780_v0, 23  ;;  %v866_v23 = vsel %vm864_vm1, %v865_v33, %v1890_v35  ;;  %vm695_vm8 = vcmp.eq.s32.totalorder %v693_v21, 0 }
 0x13e   :  { %v1078_v43 = vpop.eup %1077  ;;  %vm698_vm4 = vcmp.eq.s32.totalorder %v693_v21, 2  ;;  %v867_v29 = vadd.s32 %v866_v23, %v862_v51  ;;  %vm694_vm10 = vcmp.lt.s32.totalorder %v693_v21, 2  ;;  %vm705_vm9 = vcmp.lt.s32.totalorder %v1517_v31, 0 }
 0x13f   :  { %v1080_v6 = vpop.eup %1079  ;;  %v699_v13 = vxor.u32 2147483648, %v1078_v43  ;;  %v782_v8 = vor.u32 4788187, %v781_v38  ;;  %v785_v15 = vcvt.s32.f32 %v778_v22  ;;  %v789_v1 = vsub.s32 4, %v1843_v47 }
 0x140   :  { %v696_v53 = vxor.u32 2147483648, %v1080_v6  ;;  %v868_v56 = vadd.s32 536870912, %v867_v29  ;;  %vm704_vm13 = vcmp.le.f32.partialorder %v703_v36, 0.7853982  ;;  %v863_v36 = vadd.s32 %v1889_v20, %v1905_v46 }
 0x141   :  { %v700_v52 = vsel %vm698_vm4, %v699_v13, %v1080_v6  ;;  %v783_v54 = vand.u32 2147483647, %v782_v8  ;;  %v790_v50 = vsel %vm705_vm9, %v789_v1, %v1843_v47  ;;  %v939_v60 = vrot.slane %v1471_v39, %v57_v4 }
 0x142   :  { %v697_v37 = vsel %vm695_vm8, %v1078_v43, %v696_v53  ;;  %v869_v40 = vshrl.u32 %v868_v56, 30  ;;  %v792_v11 = vsel %vm704_vm13, 0, %v790_v50  ;;  %vm795_vm2 = vweird.f32 %v1517_v31 }
 0x143   :  { %v701_v30 = vsel %vm694_vm10, %v697_v37, %v700_v52  ;;  %v786_v45 = vmul.f32 %v785_v15, %v783_v54  ;;  %v796_v34 = vadd.s32 3, %v792_v11  ;;  %vm809_vm3 = vcmp.lt.s32.totalorder %v1172_v18, 0 }
 0x144   :  { %v702_v17 = vsel %vm691_vm12, nan, %v701_v30  ;;  %v870_v19 = vshll.u32 %v869_v40, 30  ;;  %v893_v43 = vsub.s32 4, %v869_v40  ;;  %vm808_vm5 = vcmp.le.f32.partialorder %v807_v5, 0.7853982 }
 0x145   :  { %v787_v58 = vxor.u32 2147483648, %v786_v45  ;;  %v957_v42 = vmul.f32 %v935_v59, %v702_v17  ;;  %v797_v48 = vand.u32 3, %v796_v34  ;;  %v943_v5 = vrot.slane %v1471_v39, %v61_v9 }
 0x146   :  { %v871_v28 = vsub.s32 %v867_v29, %v870_v19  ;;  %v894_v6 = vsel %vm809_vm3, %v893_v43, %v869_v40  ;;  %vm899_vm8 = vweird.f32 %v1172_v18 }
 0x147   :  { %v788_v44 = vsel %vm705_vm9, %v787_v58, %v786_v45  ;;  %965 = vst [vmem:[#allocation2 + $0x28] sm:$0xff] %v957_v42  ;;  %vm802_vm11 = vcmp.eq.s32.totalorder %v797_v48, 2  ;;  %vm799_vm15 = vcmp.eq.s32.totalorder %v797_v48, 0  ;;  %vm798_vm0 = vcmp.lt.s32.totalorder %v797_v48, 2 }
 0x148   :  { %v791_v12 = vsel %vm704_vm13, %v1517_v31, %v788_v44  ;;  %v873_v62 = vsub.s32 0, %v871_v28  ;;  %v896_v31 = vsel %vm808_vm5, 0, %v894_v6 }
 0x149   :  { %1081 = vcosq.f32 %v791_v12  ;;  %v900_v13 = vadd.s32 3, %v896_v31 }
 0x14a   :  { %1083 = vsinq.f32 %v791_v12  ;;  %v1011_v57 = vmin.u32 %v873_v62, %v871_v28 }
 0x14b   :  { %v901_v8 = vand.u32 3, %v900_v13 }
 0x14c   :  { %v875_v32 = vclz %v1011_v57 }
 0x14d   :  { %vm906_vm6 = vcmp.eq.s32.totalorder %v901_v8, 2  ;;  %vm903_vm7 = vcmp.eq.s32.totalorder %v901_v8, 0  ;;  %vm902_vm1 = vcmp.lt.s32.totalorder %v901_v8, 2 }
 0x14e   :  { %v1012_v41 = vadd.s32 4294967294, %v875_v32 }
 0x150   :  { %vm1013_vm14 = vcmp.lt.s32.totalorder %v1012_v41, 0 }
 0x151   :  { %v878_v24 = vsel %vm1013_vm14, 0, %v1012_v41 }
 0x152   :  { %v879_v35 = vsub.s32 32, %v878_v24  ;;  %v883_v16 = vsub.s32 4294967266, %v878_v24  ;;  %v880_v14 = vshll.u32 %v871_v28, %v878_v24 }
 0x154   :  { %v881_v61 = vshrl.u32 %v863_v36, %v879_v35  ;;  %v884_v10 = vadd.s32 127, %v883_v16 }
 0x156   :  { %v1082_v49 = vpop.eup %1081  ;;  %v882_v7 = vor.u32 %v881_v61, %v880_v14  ;;  %v885_v25 = vshll.u32 %v884_v10, 23 }
 0x157   :  { %v1084_v47 = vpop.eup %1083  ;;  %v803_v26 = vxor.u32 2147483648, %v1082_v49 }
 0x158   :  { %v800_v63 = vxor.u32 2147483648, %v1084_v47  ;;  %v886_v46 = vor.u32 4788187, %v885_v25  ;;  %v889_v33 = vcvt.s32.f32 %v882_v7 }
 0x159   :  { %v804_v2 = vsel %vm802_vm11, %v803_v26, %v1084_v47 }
 0x15a   :  { %v801_v20 = vsel %vm799_vm15, %v1082_v49, %v800_v63  ;;  %v887_v0 = vand.u32 2147483647, %v886_v46 }
 0x15b   :  { %v805_v55 = vsel %vm798_vm0, %v801_v20, %v804_v2 }
 0x15c   :  { %v806_v27 = vsel %vm795_vm2, nan, %v805_v55  ;;  %v890_v22 = vmul.f32 %v889_v33, %v887_v0 }
 0x15d   :  { %v958_v21 = vmul.f32 %v939_v60, %v806_v27 }
 0x15e   :  { %v891_v38 = vxor.u32 2147483648, %v890_v22 }
 0x15f   :  { %966 = vst [vmem:[#allocation2 + $0x30] sm:$0xff] %v958_v21 }
 0x160   :  { %v892_v4 = vsel %vm809_vm3, %v891_v38, %v890_v22 }
 0x161   :  { %v895_v51 = vsel %vm808_vm5, %v1172_v18, %v892_v4 }
 0x162   :  { %1085 = vcosq.f32 %v895_v51 }
 0x163   :  { %1087 = vsinq.f32 %v895_v51 }
 0x16f   :  { %v1086_v23 = vpop.eup %1085 }
 0x170   :  { %v1088_v53 = vpop.eup %1087  ;;  %v907_v29 = vxor.u32 2147483648, %v1086_v23 }
 0x171   :  { %v904_v52 = vxor.u32 2147483648, %v1088_v53 }
 0x172   :  { %v908_v54 = vsel %vm906_vm6, %v907_v29, %v1088_v53 }
 0x173   :  { %v905_v15 = vsel %vm903_vm7, %v1086_v23, %v904_v52 }
 0x174   :  { %v909_v59 = vsel %vm902_vm1, %v905_v15, %v908_v54 }
 0x175   :  { %v910_v37 = vsel %vm899_vm8, nan, %v909_v59 }
 0x176   :  { %v959_v56 = vmul.f32 %v943_v5, %v910_v37 }
 0x178   :  { %967 = vst [vmem:[#allocation2 + $0x38] sm:$0xff] %v959_v56 }
 0x179   :  { %1100 = shalt.err (!%p1097_p4)
}
 0x17a   :  { %977 = dma.vmem_to_hbm [thread:$0]  %s975_s1, 1024, %s1942_s2, [#allocation3]  }
 0x17b   :  { %1109 = dma.done.wait [#allocation3], 1024  }
 0x17c   :  { %1110 = vsyncadd [#allocation3], 4294966272 }
 0x17d   :  { %981 = vsyncpa [#allocation3], 1 }

</bundles_post_ra>
